<compile_context>
chip_gen: v7x
topology: tpu7x:2x2x1
jax: 0.10.0
libtpu: 0.0.40
codegen_flags: <defaults>
</compile_context>

<pallas_src>
import jax
import jax.numpy as jnp
from jax import lax
from jax.experimental import pallas as pl
from jax.experimental.pallas import tpu as pltpu

LN_EPS = 1e-12  # config.layer_norm_eps default in BERT


def adapter_bert_output_kernel(h_ref, w_ref, p_ref, res_ref, o_ref):
    # h_ref:   (tm, I)  intermediate activations (native dtype)
    # w_ref:   (I, H)   dense weight, pre-transposed in the wrapper
    # p_ref:   (3, H)   f32 packed params: [bias, ln_gamma, ln_beta]
    # res_ref: (tm, H)  residual (input_tensor)
    # o_ref:   (tm, H)  output
    h = h_ref[...]
    w = w_ref[...]

    # dense: y = h @ W^T, contraction dim (I) already on the RHS sublane axis.
    # Native-dtype operands (bf16 hits the bf16 MXU path), f32 accumulation.
    y = jnp.dot(h, w, preferred_element_type=jnp.float32)

    bias = p_ref[0:1, :]
    gamma = p_ref[1:2, :]
    beta = p_ref[2:3, :]

    # dropout (inference) -> identity; fused bias + residual add, in f32.
    y = y + (res_ref[...].astype(jnp.float32) + bias)

    # LayerNorm over the hidden axis: one-pass stats (sum, sum of squares).
    inv_h = 1.0 / y.shape[-1]
    s = jnp.sum(y, axis=-1, keepdims=True)
    ss = jnp.sum(y * y, axis=-1, keepdims=True)
    mean = s * inv_h
    var = jnp.maximum(ss * inv_h - mean * mean, 0.0)
    inv = lax.rsqrt(var + LN_EPS)

    o_ref[...] = ((y - mean) * inv * gamma + beta).astype(o_ref.dtype)


def _vmem_capacity_bytes():
    # TODO(synk): on v7x confirm this reports per-TensorCore (64 MiB) VMEM,
    # not per-chip; the 64 MiB fallback is the conservative per-TC value.
    try:
        cap = int(pltpu.get_tpu_info().vmem_capacity_bytes)
        return max(32 << 20, min(cap, 128 << 20))
    except Exception:
        return 64 * 1024 * 1024


def _choose_tile_m(M, I, H, act_itemsize, w_itemsize, vmem_cap):
    """Pick a token-tile size whose double-buffered working set fits VMEM."""
    budget = int(vmem_cap * 0.55)
    # Pallas allocates 2 buffers per input even for constant-index (resident)
    # operands -> charge the weight (and the tiny packed params) twice.
    resident = 2 * (I * H * w_itemsize + 8 * H * 4)
    # Streamed bytes per token row: h tile + residual tile + output tile,
    # each double-buffered.
    per_row = 2 * (I + 2 * H) * act_itemsize
    avail = budget - resident
    tm = (avail // per_row) if avail > 0 else 0
    # MXU-native rounding: multiple of 256 (v6e/v7x 2x256x256; also a multiple
    # of v5e's 128).  Cap at 512: measured diminishing returns beyond, and it
    # keeps v7x's 64 MiB per-TC VMEM comfortable.
    tm = max(256, min(512, (tm // 256) * 256))
    if tm >= M:
        return M
    # Prefer an even tile count so the 'parallel' token axis splits evenly
    # across v7x's two TensorCores.
    ntiles = -(-M // tm)
    if tm == 512 and ntiles > 1 and ntiles % 2 == 1 and (-(-M // 256)) % 2 == 0:
        tm = 256
    return tm


def adapter_bert_output(hidden_states, input_tensor, dense_w, dense_b,
                        ln_gamma, ln_beta, *, tile_m=None):
    """Fused AdapterBertOutput forward (eval-mode dropout).

    hidden_states: (batch, seq, intermediate)
    input_tensor:  (batch, seq, hidden)
    dense_w:       (hidden, intermediate)  -- PyTorch nn.Linear weight layout
    dense_b:       (hidden,)
    ln_gamma, ln_beta: (hidden,)
    returns:       (batch, seq, hidden)
    """
    B, S, I = hidden_states.shape
    H = input_tensor.shape[-1]
    M = B * S

    act_dtype = hidden_states.dtype
    h2 = hidden_states.reshape(M, I)
    r2 = input_tensor.reshape(M, H)

    # One-time (per call, amortized over all tiles) transpose so the MXU RHS
    # has the contraction dim on sublanes.  Match the activation dtype so a
    # bf16 model takes the bf16 MXU path (f32 accumulation keeps LN accuracy;
    # small weight-quantization numerics change when dense_w was f32).
    w_t = dense_w.T.astype(act_dtype)                      # (I, H)

    # Pack bias / gamma / beta as f32 once, one resident operand.
    params = jnp.stack(
        [dense_b.astype(jnp.float32),
         ln_gamma.astype(jnp.float32),
         ln_beta.astype(jnp.float32)], axis=0)             # (3, H)

    act_itemsize = jnp.dtype(act_dtype).itemsize
    w_itemsize = jnp.dtype(w_t.dtype).itemsize
    vmem_cap = _vmem_capacity_bytes()
    if tile_m is None:
        tm = _choose_tile_m(M, I, H, act_itemsize, w_itemsize, vmem_cap)
    else:
        tm = min(tile_m, M)

    grid = (pl.cdiv(M, tm),)

    # VMEM limit: resident params (x2 buffers) + double-buffered streamed
    # tiles + slack.
    resident_bytes = 2 * (I * H * w_itemsize + 8 * H * 4)
    streamed_bytes = 2 * tm * (I + 2 * H) * act_itemsize
    vmem_limit = int((resident_bytes + streamed_bytes) * 1.25) + (4 << 20)
    vmem_limit = max(vmem_limit, 32 << 20)
    vmem_limit = min(vmem_limit, int(0.9 * vmem_cap))

    out2 = pl.pallas_call(
        adapter_bert_output_kernel,
        out_shape=jax.ShapeDtypeStruct((M, H), act_dtype),
        grid_spec=pltpu.PrefetchScalarGridSpec(
            num_scalar_prefetch=0,
            grid=grid,
            in_specs=[
                pl.BlockSpec((tm, I), lambda i: (i, 0)),   # hidden_states tile
                pl.BlockSpec((I, H), lambda i: (0, 0)),    # weight (resident)
                pl.BlockSpec((3, H), lambda i: (0, 0)),    # packed params
                pl.BlockSpec((tm, H), lambda i: (i, 0)),   # residual tile
            ],
            out_specs=pl.BlockSpec((tm, H), lambda i: (i, 0)),
        ),
        compiler_params=pltpu.CompilerParams(
            dimension_semantics=("parallel",),
            vmem_limit_bytes=vmem_limit),
    )(h2, w_t, params, r2)

    return out2.reshape(B, S, H)


def _reference(hidden_states, input_tensor, dense_w, dense_b, ln_gamma,
               ln_beta):
    y = jnp.einsum("bsi,hi->bsh", hidden_states, dense_w) + dense_b
    y = y + input_tensor
    mean = jnp.mean(y, axis=-1, keepdims=True)
    var = jnp.mean((y - mean) ** 2, axis=-1, keepdims=True)
    return (y - mean) * lax.rsqrt(var + LN_EPS) * ln_gamma + ln_beta


if __name__ == "__main__":
    # Small config consistent with the module:
    #   intermediate_size=64, hidden_size=32, batch=2, seq=8
    B, S, I, H = 2, 8, 64, 32

    key = jax.random.PRNGKey(0)
    k1, k2, k3, k4 = jax.random.split(key, 4)

    hidden_states = jax.random.normal(k1, (B, S, I), dtype=jnp.float32)
    input_tensor = jax.random.normal(k2, (B, S, H), dtype=jnp.float32)

    # Deterministic parameter init (synthetic, no checkpoint load).
    dense_w = jax.random.normal(k3, (H, I), dtype=jnp.float32) * 0.02
    dense_b = jax.random.normal(k4, (H,), dtype=jnp.float32) * 0.02
    ln_gamma = jnp.ones((H,), dtype=jnp.float32)
    ln_beta = jnp.zeros((H,), dtype=jnp.float32)

    out = adapter_bert_output(hidden_states, input_tensor, dense_w, dense_b,
                              ln_gamma, ln_beta)
    out = jax.block_until_ready(out)

    ref = _reference(hidden_states, input_tensor, dense_w, dense_b, ln_gamma,
                     ln_beta)
    assert out.shape == (B, S, H)
    assert jnp.allclose(out, ref, atol=1e-4, rtol=1e-4), "mismatch vs reference"

    print("KERNEL_OK")
</pallas_src>

<mosaic_0001>
module attributes {stable_mosaic.version = 11 : i64} {
  func.func @adapter_bert_output_kernel(%arg0: i32, %arg1: memref<16x64xf32, #tpu.memory_space<vmem>>, %arg2: memref<64x32xf32, #tpu.memory_space<vmem>>, %arg3: memref<3x32xf32, #tpu.memory_space<vmem>>, %arg4: memref<16x32xf32, #tpu.memory_space<vmem>>, %arg5: memref<16x32xf32, #tpu.memory_space<vmem>>) attributes {dimension_semantics = [#tpu.dimension_semantics<parallel>], iteration_bounds = array<i64: 1>, scalar_prefetch = 0 : i64, scratch_operands = 0 : i64, tpu.core_type = #tpu.core_type<tc>, window_params = [{transform_indices = @transform_0, window_bounds = array<i64: 16, 64>}, {pipeline_mode = #tpu.pipeline_mode<synchronous>, transform_indices = @transform_1, window_bounds = array<i64: 64, 32>}, {pipeline_mode = #tpu.pipeline_mode<synchronous>, transform_indices = @transform_2, window_bounds = array<i64: 3, 32>}, {transform_indices = @transform_3, window_bounds = array<i64: 16, 32>}, {transform_indices = @transform_4, window_bounds = array<i64: 16, 32>}]} {
    %c0 = arith.constant 0 : index
    %c0_0 = arith.constant 0 : index
    %0 = vector.load %arg1[%c0, %c0_0] : memref<16x64xf32, #tpu.memory_space<vmem>>, vector<16x64xf32>
    %c0_1 = arith.constant 0 : index
    %c0_2 = arith.constant 0 : index
    %1 = vector.load %arg2[%c0_1, %c0_2] : memref<64x32xf32, #tpu.memory_space<vmem>>, vector<64x32xf32>
    %cst = arith.constant dense<0.000000e+00> : vector<16x32xf32>
    %2 = tpu.matmul %0, %1, %cst {dimension_numbers = #tpu.dot_dimension_numbers<[1], [0], [0], [1], [0, 0, 1, 1], [], []>} : vector<16x64xf32>, vector<64x32xf32>, vector<16x32xf32> -> vector<16x32xf32>
    %c0_3 = arith.constant 0 : index
    %c0_4 = arith.constant 0 : index
    %3 = vector.load %arg3[%c0_3, %c0_4] : memref<3x32xf32, #tpu.memory_space<vmem>>, vector<1x32xf32>
    %c1 = arith.constant 1 : index
    %c0_5 = arith.constant 0 : index
    %4 = vector.load %arg3[%c1, %c0_5] : memref<3x32xf32, #tpu.memory_space<vmem>>, vector<1x32xf32>
    %c2 = arith.constant 2 : index
    %c0_6 = arith.constant 0 : index
    %5 = vector.load %arg3[%c2, %c0_6] : memref<3x32xf32, #tpu.memory_space<vmem>>, vector<1x32xf32>
    %c0_7 = arith.constant 0 : index
    %c0_8 = arith.constant 0 : index
    %6 = vector.load %arg4[%c0_7, %c0_8] : memref<16x32xf32, #tpu.memory_space<vmem>>, vector<16x32xf32>
    %7 = vector.broadcast %3 : vector<1x32xf32> to vector<16x32xf32>
    %8 = arith.addf %6, %7 : vector<16x32xf32>
    %9 = arith.addf %2, %8 : vector<16x32xf32>
    %cst_9 = arith.constant dense<0.000000e+00> : vector<16xf32>
    %10 = vector.multi_reduction <add>, %9, %cst_9 [1] : vector<16x32xf32> to vector<16xf32>
    %11 = vector.shape_cast %10 : vector<16xf32> to vector<16x1xf32>
    %12 = arith.mulf %9, %9 : vector<16x32xf32>
    %cst_10 = arith.constant dense<0.000000e+00> : vector<16xf32>
    %13 = vector.multi_reduction <add>, %12, %cst_10 [1] : vector<16x32xf32> to vector<16xf32>
    %14 = vector.shape_cast %13 : vector<16xf32> to vector<16x1xf32>
    %cst_11 = arith.constant 3.125000e-02 : f32
    %15 = vector.broadcast %cst_11 : f32 to vector<16x1xf32>
    %16 = arith.mulf %11, %15 : vector<16x1xf32>
    %cst_12 = arith.constant 3.125000e-02 : f32
    %17 = vector.broadcast %cst_12 : f32 to vector<16x1xf32>
    %18 = arith.mulf %14, %17 : vector<16x1xf32>
    %19 = arith.mulf %16, %16 : vector<16x1xf32>
    %20 = arith.subf %18, %19 : vector<16x1xf32>
    %cst_13 = arith.constant 0.000000e+00 : f32
    %21 = vector.broadcast %cst_13 : f32 to vector<16x1xf32>
    %22 = arith.maximumf %20, %21 : vector<16x1xf32>
    %cst_14 = arith.constant 9.99999996E-13 : f32
    %23 = vector.broadcast %cst_14 : f32 to vector<16x1xf32>
    %24 = arith.addf %22, %23 : vector<16x1xf32>
    %25 = math.rsqrt %24 : vector<16x1xf32>
    %26 = vector.broadcast %16 : vector<16x1xf32> to vector<16x32xf32>
    %27 = arith.subf %9, %26 : vector<16x32xf32>
    %28 = vector.broadcast %25 : vector<16x1xf32> to vector<16x32xf32>
    %29 = arith.mulf %27, %28 : vector<16x32xf32>
    %30 = vector.broadcast %4 : vector<1x32xf32> to vector<16x32xf32>
    %31 = arith.mulf %29, %30 : vector<16x32xf32>
    %32 = vector.broadcast %5 : vector<1x32xf32> to vector<16x32xf32>
    %33 = arith.addf %31, %32 : vector<16x32xf32>
    %c0_15 = arith.constant 0 : index
    %c0_16 = arith.constant 0 : index
    %34 = vector.load %arg5[%c0_15, %c0_16] : memref<16x32xf32, #tpu.memory_space<vmem>>, vector<16x32xf32>
    tpu.vector_store %arg5[%c0_15, %c0_16], %33 {strides = array<i32>} : memref<16x32xf32, #tpu.memory_space<vmem>>, vector<16x32xf32>,
    return
  }
  func.func @transform_0(%arg0: i32) -> (i32, i32) {
    %c0_i32 = arith.constant 0 : i32
    %c0_i32_0 = arith.constant 0 : i32
    return %arg0, %c0_i32 : i32, i32
  }
  func.func @transform_1(%arg0: i32) -> (i32, i32) {
    %c0_i32 = arith.constant 0 : i32
    %c0_i32_0 = arith.constant 0 : i32
    %c0_i32_1 = arith.constant 0 : i32
    return %c0_i32, %c0_i32_0 : i32, i32
  }
  func.func @transform_2(%arg0: i32) -> (i32, i32) {
    %c0_i32 = arith.constant 0 : i32
    %c0_i32_0 = arith.constant 0 : i32
    %c0_i32_1 = arith.constant 0 : i32
    return %c0_i32, %c0_i32_0 : i32, i32
  }
  func.func @transform_3(%arg0: i32) -> (i32, i32) {
    %c0_i32 = arith.constant 0 : i32
    %c0_i32_0 = arith.constant 0 : i32
    return %arg0, %c0_i32 : i32, i32
  }
  func.func @transform_4(%arg0: i32) -> (i32, i32) {
    %c0_i32 = arith.constant 0 : i32
    %c0_i32_0 = arith.constant 0 : i32
    return %arg0, %c0_i32 : i32, i32
  }
}

</mosaic_0001>

<bundles_post_ra>
// kernel: tpu_custom_call.1
= control target key start
LH: loop header
LB: loop body
LE: loop exit
PB: predicated region body
PF: predicated region fallthrough
CT: control target
= control target key end

     0   :  { %vm39_vm0 = vcmask 523264   ;;  %s358_s0 = inlined_call_operand.vmem [shape: f32[16,64], index: 0, kind: input, shape index: {}]   ;;  %s359_s1 = inlined_call_operand.vmem [shape: f32[64,32], index: 1, kind: input, shape index: {}]   ;;  %s360_s2 = inlined_call_operand.vmem [shape: f32[3,32], index: 2, kind: input, shape index: {}]   ;;  %s361_s3 = inlined_call_operand.vmem [shape: f32[16,32], index: 3, kind: input, shape index: {}]   ;;  %s362_s4 = inlined_call_operand.hbm [shape: f32[16,32], index: 4, kind: output, shape index: {}]  }
   0x1   :  { %v20_v0 = vld [vmem:[%s359_s1] sm:$0xff]  ;;  %v21_v1 = vld [vmem:[%s359_s1 + $0x8] sm:$0xff]  ;;  %v22_v2 = vld [vmem:[%s359_s1 + $0x10] sm:$0xff] }
   0x2   :  { %v218_v3 = vpack.c.bf16 %v21_v1, %v20_v0  ;;  %v23_v4 = vld [vmem:[%s359_s1 + $0x18] sm:$0xff]  ;;  %v24_v6 = vld [vmem:[%s359_s1 + $0x20] sm:$0xff]  ;;  %v25_v7 = vld [vmem:[%s359_s1 + $0x28] sm:$0xff] }
   0x3   :  { %v222_v5 = vpack.c.bf16 %v23_v4, %v22_v2  ;;  %v18_v8 = vld [vmem:[%s358_s0] sm:$0xff] }
   0x4   :  { %219 = vmatprep.subr.bf16.mxu0 %v218_v3  ;;  %215 = vmatprep.mubr.msk.f32.mxu0 %vm39_vm0, %v18_v8 }
   0x5   :  { %221 = vmatpush3.bf16.msra.mxu0 %v218_v3 }
   0x6   :  { %9 = vsyncpa [#allocation3], 0  ;;  %223 = vmatprep.subr.bf16.mxu0 %v222_v5  ;;  %v226_v9 = vpack.c.bf16 %v25_v7, %v24_v6  ;;  %v26_v10 = vld [vmem:[%s359_s1 + $0x30] sm:$0xff]  ;;  %v27_v11 = vld [vmem:[%s359_s1 + $0x38] sm:$0xff]  ;;  %vm121_vm1 = vcmask 261120   ;;  %s265_s16 = smov [#allocation2]  }
   0x7   :  { %v230_v12 = vpack.c.bf16 %v27_v11, %v26_v10  ;;  %v19_v13 = vld [vmem:[%s358_s0 + $0x8] sm:$0xff]  ;;  %v184_v14 = vld [vmem:[%s360_s2] ss:$0 sm:$0xff]  ;;  %v187_v47 = vld [vmem:[%s360_s2 + $0x1] ss:$0 sm:$0xff]  ;;  %s173_s17 = sshll.u32 %s265_s16, 4  ;;  %s174_s17 = int_to_ptr.vmem [resolvable:$true] %s173_s17 }
   0x8   :  { %v32_v15 = vld [vmem:[%s361_s3 + $0x8] sm:$0xff]  ;;  %v31_v16 = vld [vmem:[%s361_s3] sm:$0xff]  ;;  %s241_s18 = scalar_lea.vmem %s174_s17, 256  ;;  %p246_p1 = scmp.lt.s32.totalorder %s174_s17, %s174_s17 }
   0x9   :  { %225 = vmatpush3.bf16.msra.mxu0 %v222_v5  ;;  %v38_v17 = vadd.f32 %v184_v14, %v32_v15  ;;  %v37_v18 = vadd.f32 %v184_v14, %v31_v16  ;;  %v188_v49 = vld [vmem:[%s360_s2 + $0x2] ss:$0 sm:$0xff]  ;;  %p242_p0 = scmp.ne.s32.totalorder %s174_s17, %s241_s18  ;;  %p247_p2 = scmp.lt.s32.totalorder %s241_s18, %s241_s18 }
   0xa   :  { %227 = vmatprep.subr.bf16.mxu0 %v226_v9 }
   0xb   :  { %p248_p3 = por %p247_p2, %p246_p1 }
   0xd   :  { %229 = vmatpush3.bf16.msra.mxu0 %v226_v9  ;;  %p249_p4 = pnand %p248_p3, %p242_p0 }
   0xe   :  { %231 = vmatprep.subr.bf16.mxu0 %v230_v12 }
  0x11   :  { %233 = vmatpush3.bf16.msra.mxu0 %v230_v12 }
  0x14   :  { %216 = vmatmul.mubr.msk.f32.vlgmr.msra.gmra.mrb[0].mxu0 %vm39_vm0, %v19_v13 }
  0xe7   :  { %v217_v19 = vpop.f32.mrb[0].mxu0 }
  0xe8   :  { %v112_v20 = vpop.f32.mrb[1].mxu0  ;;  %v118_v21 = vadd.f32 %v217_v19, %v38_v17 }
  0xe9   :  { %v113_v22 = vadd.f32 %v112_v20, %v37_v18 }
  0xea   :  { %v129_v26 = vmul.f32 %v118_v21, %v118_v21  ;;  %v125_v27 = vsel %vm121_vm1, %v118_v21, 0.0 }
  0xeb   :  { %v122_v23 = vsel %vm121_vm1, %v113_v22, 0.0  ;;  %v128_v24 = vmul.f32 %v113_v22, %v113_v22 }
  0xec   :  { %123 = vadd.xlane.f32.xlu0 %v122_v23  ;;  %v133_v28 = vsel %vm121_vm1, %v129_v26, 0.0 }
  0xed   :  { %v130_v25 = vsel %vm121_vm1, %v128_v24, 0.0 }
  0xee   :  { %131 = vadd.xlane.f32.xlu1 %v130_v25 }
  0xf0   :  { %126 = vadd.xlane.f32.xlu0 %v125_v27 }
  0xf2   :  { %134 = vadd.xlane.f32.xlu1 %v133_v28 }
 0x179   :  { %v124_v29 = vpop.xlane.xlu0 %123 }
 0x17a   :  { %v136_v30 = vmul.f32 0.03125, %v124_v29 }
 0x17b   :  { %v132_v31 = vpop.xlane.xlu1 %131 }
 0x17c   :  { %v140_v32 = vmul.f32 %v136_v30, %v136_v30  ;;  %v138_v33 = vmul.f32 0.03125, %v132_v31  ;;  %v150_v45 = vsub.f32 %v113_v22, %v136_v30 }
 0x17d   :  { %v127_v34 = vpop.xlane.xlu0 %126 }
 0x17e   :  { %v142_v35 = vsub.f32 %v138_v33, %v140_v32  ;;  %v137_v36 = vmul.f32 0.03125, %v127_v34 }
 0x17f   :  { %v135_v37 = vpop.xlane.xlu1 %134 }
 0x180   :  { %v144_v38 = vmax.f32 %v142_v35, 0.0  ;;  %v141_v39 = vmul.f32 %v137_v36, %v137_v36  ;;  %v139_v40 = vmul.f32 0.03125, %v135_v37  ;;  %v151_v50 = vsub.f32 %v118_v21, %v137_v36 }
 0x182   :  { %v146_v41 = vadd.f32 1e-12, %v144_v38  ;;  %v143_v42 = vsub.f32 %v139_v40, %v141_v39 }
 0x184   :  { %237 = vrsqrt.f32 %v146_v41  ;;  %v145_v43 = vmax.f32 %v143_v42, 0.0 }
 0x186   :  { %v147_v44 = vadd.f32 1e-12, %v145_v43 }
 0x188   :  { %239 = vrsqrt.f32 %v147_v44 }
 0x18e   :  { %v238_v46 = vpop.eup %237 }
 0x18f   :  { %v152_v48 = vmul.f32 %v238_v46, %v150_v45 }
 0x191   :  { %v158_v51 = vmul.f32 %v187_v47, %v152_v48 }
 0x192   :  { %v240_v52 = vpop.eup %239 }
 0x193   :  { %v153_v53 = vmul.f32 %v240_v52, %v151_v50  ;;  %v164_v54 = vadd.f32 %v188_v49, %v158_v51 }
 0x195   :  { %v159_v55 = vmul.f32 %v187_v47, %v153_v53  ;;  %166 = vst.msk [vmem:[#allocation2] sm:$0xff] %vm121_vm1, %v164_v54 }
 0x197   :  { %v165_v56 = vadd.f32 %v188_v49, %v159_v55 }
 0x199   :  { %167 = vst.msk [vmem:[#allocation2 + $0x8] sm:$0xff] %vm121_vm1, %v165_v56 }
 0x19a   :  { %252 = shalt.err (!%p249_p4)
}
 0x19b   :  { %s253_s20 = scalar_lea.hbm %s362_s4, 256 }
 0x19c   :  { %p254_p5 = scmp.ne.s32.totalorder %s362_s4, %s253_s20  ;;  %p257_p6 = scmp.lt.u32.totalorder %s253_s20, %s362_s4 }
 0x19e   :  { %p259_p7 = pnand %p257_p6, %p254_p5 }
 0x1a0   :  { %262 = shalt.err (!%p259_p7)
}
 0x1a1   :  { %s266_s25 = smov 128   ;;  %s267_s26 = smov 8  }
 0x1a2   :  { %179 = dma.vmem_to_hbm [thread:$0]  %s174_s17, 256, %s362_s4, [#allocation3], %s266_s25, %s266_s25, %s267_s26  }
 0x1a3   :  { %263 = dma.done.wait [#allocation3], 256  }
 0x1a4   :  { %264 = vsyncadd [#allocation3], 4294967040 }
 0x1a5   :  { %183 = vsyncpa [#allocation3], 1 }

</bundles_post_ra>
